<compile_context>
chip_gen: v5e
topology: v5e:2x2
jax: 0.10.0
libtpu: 0.0.40
codegen_flags: <defaults>
</compile_context>

<pallas_src>
import functools

import jax
import jax.numpy as jnp
from jax import lax
from jax.experimental import pallas as pl
from jax.experimental.pallas import tpu as pltpu


def _cosine_attn_kernel(q_ref, k_ref, v_ref, o_ref, *rest,
                        temperature, eps, exp_dtype):
    """rest = (s_ref?, kn_ref); s_ref present only when the score output is kept."""
    if len(rest) == 2:
        s_ref, kn_ref = rest
    else:
        s_ref = None
        (kn_ref,) = rest

    inv_temp = 1.0 / temperature
    eps_sq = eps * eps

    # k_norm is identical for every query tile of this (batch, head) block:
    # compute it once (first q-tile step) into a VMEM scratch and reuse it.
    @pl.when(pl.program_id(1) == 0)
    def _():
        kf = k_ref[...].astype(jnp.float32)                      # (BHT, L, D)
        k_inv = lax.rsqrt(
            jnp.maximum(jnp.sum(kf * kf, axis=-1, keepdims=True), eps_sq))
        kn_ref[...] = (kf * k_inv).astype(kn_ref.dtype)

    q = q_ref[...]                                               # (BHT, TQ, D)
    qf = q.astype(jnp.float32)
    # F.normalize: x / max(||x||, eps) == x * rsqrt(max(sum(x^2), eps^2)).
    # Fold 1/temperature into q's per-row scale; cast back to the input dtype so
    # the MXU runs at native (e.g. bf16) rate, accumulate in f32.
    q_inv = lax.rsqrt(
        jnp.maximum(jnp.sum(qf * qf, axis=-1, keepdims=True), eps_sq))
    qn = (qf * (q_inv * inv_temp)).astype(q.dtype)
    kn = kn_ref[...]                                             # (BHT, L, D)

    # score = (q_norm @ k_norm^T) / temperature  -> (BHT, TQ, L)
    # 'nt' contraction: no materialized transpose of the k tile.
    score = lax.dot_general(
        qn, kn, (((2,), (2,)), ((0,), (0,))),
        preferred_element_type=jnp.float32)

    # Cosine scores are bounded by +/- 1/temperature.  For the usual range
    # (1/temperature <= 80) exp cannot overflow, so skip the row-max pass
    # entirely; for very small temperatures use a true row-max (a constant shift
    # could underflow a whole row and give denom == 0).
    if inv_temp > 80.0:
        score = score - jnp.max(score, axis=-1, keepdims=True)

    p = jnp.exp(score.astype(exp_dtype))                         # (BHT, TQ, L)
    denom = jnp.sum(p, axis=-1, keepdims=True, dtype=jnp.float32)
    inv_denom = pl.reciprocal(denom, approx=True)                # EUP, near-free

    v = v_ref[...]                                               # (BHT, L, D)
    if s_ref is not None:
        # Score is materialized anyway -> normalize the TQ x L block once and
        # reuse it for both the store and the PV matmul.
        p_norm = p * inv_denom
        s_ref[...] = p_norm.astype(s_ref.dtype)
        out = lax.dot_general(
            p_norm.astype(v.dtype), v, (((2,), (1,)), ((0,), (0,))),
            preferred_element_type=jnp.float32)
    else:
        # Deferred softmax normalization: scale the (TQ, D) matmul result
        # instead of the (TQ, L) probability matrix (L/D x fewer VPU mults).
        out = lax.dot_general(
            p.astype(v.dtype), v, (((2,), (1,)), ((0,), (0,))),
            preferred_element_type=jnp.float32)
        out = out * inv_denom

    o_ref[...] = out.astype(o_ref.dtype)


def _divisors_desc(n, limit=None):
    limit = n if limit is None else min(n, limit)
    return [t for t in range(limit, 0, -1) if n % t == 0]


def _estimate_vmem_bytes(bh_tile, q_tile, L, D, itm, return_score):
    """Rough per-core VMEM demand: double-buffered blocks + kn scratch + live
    f32 intermediates (score/p, normalization casts, output accumulator)."""
    f32 = 4
    blocks = 2 * bh_tile * 2 * q_tile * D * itm        # q + out blocks (2x buffered)
    blocks += 2 * bh_tile * 2 * L * D * itm            # k + v blocks (2x buffered)
    if return_score:
        blocks += 2 * bh_tile * q_tile * L * itm       # score block (2x buffered)
    scratch = bh_tile * L * D * itm                    # kn cache
    live = bh_tile * (2 * q_tile * L * f32             # f32 score + p
                      + 2 * q_tile * D * f32           # qf cast + out accumulator
                      + L * D * f32)                   # kf cast (i == 0 step)
    return blocks + scratch + live


def _pick_tiles(BH, L, D, itm, return_score, vmem_budget):
    # dtype-aware sublane alignment of the q tile (f32: 8, bf16: 16, int8/fp8: 32).
    mult = {4: 8, 2: 16, 1: 32}.get(itm, 8)
    q_cands = [t for t in _divisors_desc(L, 512) if t % mult == 0 or t == L]
    if not q_cands:
        q_cands = _divisors_desc(L, 512)
    # For tiny per-head shapes batch several (batch, head) slices per grid step
    # to amortize the ~0.35us per-step overhead and masked partial stores.
    bh0 = 1 if L >= 128 else max(1, 128 // L)
    bh_cands = [t for t in _divisors_desc(BH) if t <= bh0] or [1]
    for bh_tile in bh_cands:
        for q_tile in q_cands:
            if _estimate_vmem_bytes(bh_tile, q_tile, L, D, itm,
                                    return_score) <= vmem_budget:
                return bh_tile, q_tile
    # Nothing fits the budget: take the smallest footprint and rely on the
    # raised vmem limit / Mosaic spilling.
    return bh_cands[-1], q_cands[-1]


def cosine_similarity_attention(q, k, v, *, temperature=0.1, eps=1e-12,
                                q_tile=None, bh_tile=None, return_score=True):
    """q, k, v: (batch, head, length, d_tensor). Returns (out, score) or out."""
    B, H, L, D = q.shape
    BH = B * H
    qf = q.reshape(BH, L, D)
    kf = k.reshape(BH, L, D)
    vf = v.reshape(BH, L, D)
    itm = jnp.dtype(q.dtype).itemsize

    # --- chip-aware VMEM budget (64 MiB v7x, 128 MiB v5e/v6e) -----------------
    try:
        cap = getattr(pltpu.get_tpu_info(), "vmem_capacity_bytes", None)
        vmem_cap = int(cap) if cap else 64 * 2 ** 20
    except Exception:
        vmem_cap = 64 * 2 ** 20        # conservative fallback, valid on all chips
    budget = int(vmem_cap * 0.75)

    auto_bh, auto_q = _pick_tiles(BH, L, D, itm, return_score, budget)
    if q_tile is None:
        q_tile = auto_q
    if bh_tile is None:
        bh_tile = auto_bh

    n_bh = BH // bh_tile
    n_q = L // q_tile

    est = _estimate_vmem_bytes(bh_tile, q_tile, L, D, itm, return_score)
    vmem_limit = int(min(int(vmem_cap * 0.9),
                         max(32 * 2 ** 20, int(est * 1.3))))

    # exp in bf16 only when the inputs are already bf16 (bf16 EUP on v6e/v7x;
    # p is cast to v.dtype for the PV matmul anyway).  f32 inputs keep f32 exp.
    exp_dtype = jnp.bfloat16 if q.dtype == jnp.bfloat16 else jnp.float32

    in_specs = [
        pl.BlockSpec((bh_tile, q_tile, D), lambda b, i: (b, i, 0)),   # q (tiled)
        pl.BlockSpec((bh_tile, L, D), lambda b, i: (b, 0, 0)),        # k (resident over i)
        pl.BlockSpec((bh_tile, L, D), lambda b, i: (b, 0, 0)),        # v (resident over i)
    ]
    out_specs = [pl.BlockSpec((bh_tile, q_tile, D), lambda b, i: (b, i, 0))]
    out_shape = [jax.ShapeDtypeStruct((BH, L, D), q.dtype)]
    if return_score:
        out_specs.append(pl.BlockSpec((bh_tile, q_tile, L), lambda b, i: (b, i, 0)))
        out_shape.append(jax.ShapeDtypeStruct((BH, L, L), q.dtype))

    kernel = functools.partial(
        _cosine_attn_kernel, temperature=float(temperature), eps=float(eps),
        exp_dtype=exp_dtype)

    outs = pl.pallas_call(
        kernel,
        out_shape=tuple(out_shape),
        grid_spec=pltpu.PrefetchScalarGridSpec(
            num_scalar_prefetch=0,
            grid=(n_bh, n_q),
            in_specs=in_specs,
            out_specs=out_specs,
            scratch_shapes=[pltpu.VMEM((bh_tile, L, D), q.dtype)],   # kn cache
        ),
        compiler_params=pltpu.CompilerParams(
            # BH axis parallel (megacore sharding on v7x); q-tile axis must be
            # sequential so the kn-cache init at i == 0 is valid per core.
            dimension_semantics=("parallel", "arbitrary"),
            vmem_limit_bytes=vmem_limit),
    )(qf, kf, vf)

    out_f = outs[0].reshape(B, H, L, D)
    if return_score:
        return out_f, outs[1].reshape(B, H, L, L)
    return out_f


def _reference(q, k, v, temperature=0.1, eps=1e-12):
    qn = q / jnp.maximum(jnp.linalg.norm(q, axis=-1, keepdims=True), eps)
    kn = k / jnp.maximum(jnp.linalg.norm(k, axis=-1, keepdims=True), eps)
    score = jnp.einsum("bhld,bhmd->bhlm", qn, kn) / temperature
    score = jax.nn.softmax(score, axis=-1)
    return jnp.einsum("bhlm,bhmd->bhld", score, v), score


if __name__ == "__main__":
    B, H, L, D = 2, 4, 8, 32
    key = jax.random.PRNGKey(0)
    kq, kk, kv = jax.random.split(key, 3)
    q = jax.random.normal(kq, (B, H, L, D), dtype=jnp.float32)
    k = jax.random.normal(kk, (B, H, L, D), dtype=jnp.float32)
    v = jax.random.normal(kv, (B, H, L, D), dtype=jnp.float32)

    out, score = cosine_similarity_attention(q, k, v, temperature=0.1)
    out_only = cosine_similarity_attention(q, k, v, temperature=0.1,
                                           return_score=False)
    jax.block_until_ready((out, score, out_only))

    out_ref, score_ref = _reference(q, k, v)
    # Tolerances loosened slightly for the EUP approximate reciprocal.
    assert jnp.allclose(out, out_ref, atol=2e-3, rtol=2e-3)
    assert jnp.allclose(score, score_ref, atol=2e-3, rtol=2e-3)
    assert jnp.allclose(out_only, out_ref, atol=2e-3, rtol=2e-3)

    print("KERNEL_OK")
</pallas_src>

<mosaic_0001>
module attributes {stable_mosaic.version = 11 : i64} {
  func.func @_cosine_attn_kernel(%arg0: i32, %arg1: i32, %arg2: memref<8x8x32xf32, #tpu.memory_space<vmem>>, %arg3: memref<8x8x32xf32, #tpu.memory_space<vmem>>, %arg4: memref<8x8x32xf32, #tpu.memory_space<vmem>>, %arg5: memref<8x8x32xf32, #tpu.memory_space<vmem>>, %arg6: memref<8x8x8xf32, #tpu.memory_space<vmem>>, %arg7: memref<8x8x32xf32, #tpu.memory_space<vmem>>) attributes {dimension_semantics = [#tpu.dimension_semantics<parallel>, #tpu.dimension_semantics<arbitrary>], iteration_bounds = array<i64: 1, 1>, scalar_prefetch = 0 : i64, scratch_operands = 1 : i64, tpu.core_type = #tpu.core_type<tc>, window_params = [{transform_indices = @transform_0, window_bounds = array<i64: 8, 8, 32>}, {transform_indices = @transform_1, window_bounds = array<i64: 8, 8, 32>}, {transform_indices = @transform_2, window_bounds = array<i64: 8, 8, 32>}, {transform_indices = @transform_3, window_bounds = array<i64: 8, 8, 32>}, {transform_indices = @transform_4, window_bounds = array<i64: 8, 8, 8>}]} {
    %c0_i32 = arith.constant 0 : i32
    %0 = arith.cmpi eq, %arg1, %c0_i32 : i32
    %1 = arith.extui %0 : i1 to i32
    %c0_i32_0 = arith.constant 0 : i32
    %2 = arith.cmpi ne, %1, %c0_i32_0 : i32
    scf.if %2 {
      %c0_20 = arith.constant 0 : index
      %c0_21 = arith.constant 0 : index
      %c0_22 = arith.constant 0 : index
      %26 = vector.load %arg3[%c0_20, %c0_21, %c0_22] : memref<8x8x32xf32, #tpu.memory_space<vmem>>, vector<8x8x32xf32>
      %27 = arith.mulf %26, %26 : vector<8x8x32xf32>
      %cst_23 = arith.constant dense<0.000000e+00> : vector<8x8xf32>
      %28 = vector.multi_reduction <add>, %27, %cst_23 [2] : vector<8x8x32xf32> to vector<8x8xf32>
      %29 = vector.shape_cast %28 : vector<8x8xf32> to vector<8x8x1xf32>
      %cst_24 = arith.constant 1.000000e-24 : f32
      %30 = vector.broadcast %cst_24 : f32 to vector<8x8x1xf32>
      %31 = arith.maximumf %29, %30 : vector<8x8x1xf32>
      %32 = math.rsqrt %31 : vector<8x8x1xf32>
      %33 = vector.broadcast %32 : vector<8x8x1xf32> to vector<8x8x32xf32>
      %34 = arith.mulf %26, %33 : vector<8x8x32xf32>
      %c0_25 = arith.constant 0 : index
      %c0_26 = arith.constant 0 : index
      %c0_27 = arith.constant 0 : index
      %35 = vector.load %arg7[%c0_25, %c0_26, %c0_27] : memref<8x8x32xf32, #tpu.memory_space<vmem>>, vector<8x8x32xf32>
      tpu.vector_store %arg7[%c0_25, %c0_26, %c0_27], %34 {strides = array<i32>} : memref<8x8x32xf32, #tpu.memory_space<vmem>>, vector<8x8x32xf32>,
    } else {
    }
    %c0 = arith.constant 0 : index
    %c0_1 = arith.constant 0 : index
    %c0_2 = arith.constant 0 : index
    %3 = vector.load %arg2[%c0, %c0_1, %c0_2] : memref<8x8x32xf32, #tpu.memory_space<vmem>>, vector<8x8x32xf32>
    %4 = arith.mulf %3, %3 : vector<8x8x32xf32>
    %cst = arith.constant dense<0.000000e+00> : vector<8x8xf32>
    %5 = vector.multi_reduction <add>, %4, %cst [2] : vector<8x8x32xf32> to vector<8x8xf32>
    %6 = vector.shape_cast %5 : vector<8x8xf32> to vector<8x8x1xf32>
    %cst_3 = arith.constant 1.000000e-24 : f32
    %7 = vector.broadcast %cst_3 : f32 to vector<8x8x1xf32>
    %8 = arith.maximumf %6, %7 : vector<8x8x1xf32>
    %9 = math.rsqrt %8 : vector<8x8x1xf32>
    %cst_4 = arith.constant 1.000000e+01 : f32
    %10 = vector.broadcast %cst_4 : f32 to vector<8x8x1xf32>
    %11 = arith.mulf %9, %10 : vector<8x8x1xf32>
    %12 = vector.broadcast %11 : vector<8x8x1xf32> to vector<8x8x32xf32>
    %13 = arith.mulf %3, %12 : vector<8x8x32xf32>
    %c0_5 = arith.constant 0 : index
    %c0_6 = arith.constant 0 : index
    %c0_7 = arith.constant 0 : index
    %14 = vector.load %arg7[%c0_5, %c0_6, %c0_7] : memref<8x8x32xf32, #tpu.memory_space<vmem>>, vector<8x8x32xf32>
    %cst_8 = arith.constant dense<0.000000e+00> : vector<8x8x8xf32>
    %15 = tpu.matmul %13, %14, %cst_8 {dimension_numbers = #tpu.dot_dimension_numbers<[2], [2], [1], [1], [0, 0, 0, 1, 1, 1], [0], [0]>} : vector<8x8x32xf32>, vector<8x8x32xf32>, vector<8x8x8xf32> -> vector<8x8x8xf32>
    %16 = math.exp %15 : vector<8x8x8xf32>
    %cst_9 = arith.constant dense<0.000000e+00> : vector<8x8xf32>
    %17 = vector.multi_reduction <add>, %16, %cst_9 [2] : vector<8x8x8xf32> to vector<8x8xf32>
    %18 = vector.shape_cast %17 : vector<8x8xf32> to vector<8x8x1xf32>
    %19 = tpu.reciprocal %18 {approx = true} : vector<8x8x1xf32> -> vector<8x8x1xf32>
    %c0_10 = arith.constant 0 : index
    %c0_11 = arith.constant 0 : index
    %c0_12 = arith.constant 0 : index
    %20 = vector.load %arg4[%c0_10, %c0_11, %c0_12] : memref<8x8x32xf32, #tpu.memory_space<vmem>>, vector<8x8x32xf32>
    %21 = vector.broadcast %19 : vector<8x8x1xf32> to vector<8x8x8xf32>
    %22 = arith.mulf %16, %21 : vector<8x8x8xf32>
    %c0_13 = arith.constant 0 : index
    %c0_14 = arith.constant 0 : index
    %c0_15 = arith.constant 0 : index
    %23 = vector.load %arg6[%c0_13, %c0_14, %c0_15] : memref<8x8x8xf32, #tpu.memory_space<vmem>>, vector<8x8x8xf32>
    tpu.vector_store %arg6[%c0_13, %c0_14, %c0_15], %22 {strides = array<i32>} : memref<8x8x8xf32, #tpu.memory_space<vmem>>, vector<8x8x8xf32>,
    %cst_16 = arith.constant dense<0.000000e+00> : vector<8x8x32xf32>
    %24 = tpu.matmul %22, %20, %cst_16 {dimension_numbers = #tpu.dot_dimension_numbers<[2], [1], [1], [2], [0, 0, 0, 1, 1, 2], [0], [0]>} : vector<8x8x8xf32>, vector<8x8x32xf32>, vector<8x8x32xf32> -> vector<8x8x32xf32>
    %c0_17 = arith.constant 0 : index
    %c0_18 = arith.constant 0 : index
    %c0_19 = arith.constant 0 : index
    %25 = vector.load %arg5[%c0_17, %c0_18, %c0_19] : memref<8x8x32xf32, #tpu.memory_space<vmem>>, vector<8x8x32xf32>
    tpu.vector_store %arg5[%c0_17, %c0_18, %c0_19], %24 {strides = array<i32>} : memref<8x8x32xf32, #tpu.memory_space<vmem>>, vector<8x8x32xf32>,
    return
  }
  func.func @transform_0(%arg0: i32, %arg1: i32) -> (i32, i32, i32) {
    %c0_i32 = arith.constant 0 : i32
    %c0_i32_0 = arith.constant 0 : i32
    return %arg0, %arg1, %c0_i32 : i32, i32, i32
  }
  func.func @transform_1(%arg0: i32, %arg1: i32) -> (i32, i32, i32) {
    %c0_i32 = arith.constant 0 : i32
    %c0_i32_0 = arith.constant 0 : i32
    %c0_i32_1 = arith.constant 0 : i32
    return %arg0, %c0_i32, %c0_i32_0 : i32, i32, i32
  }
  func.func @transform_2(%arg0: i32, %arg1: i32) -> (i32, i32, i32) {
    %c0_i32 = arith.constant 0 : i32
    %c0_i32_0 = arith.constant 0 : i32
    %c0_i32_1 = arith.constant 0 : i32
    return %arg0, %c0_i32, %c0_i32_0 : i32, i32, i32
  }
  func.func @transform_3(%arg0: i32, %arg1: i32) -> (i32, i32, i32) {
    %c0_i32 = arith.constant 0 : i32
    %c0_i32_0 = arith.constant 0 : i32
    return %arg0, %arg1, %c0_i32 : i32, i32, i32
  }
  func.func @transform_4(%arg0: i32, %arg1: i32) -> (i32, i32, i32) {
    %c0_i32 = arith.constant 0 : i32
    %c0_i32_0 = arith.constant 0 : i32
    return %arg0, %arg1, %c0_i32 : i32, i32, i32
  }
}

</mosaic_0001>

<bundles_post_ra>
// kernel: tpu_custom_call.1
= control target key start
LH: loop header
LB: loop body
LE: loop exit
PB: predicated region body
PF: predicated region fallthrough
CT: control target
= control target key end

     0   :  { %10 = vsyncpa [#allocation4], 0  ;;  %s1521_s0 = inlined_call_operand.hbm [shape: f32[8,8,32], index: 0, kind: input, shape index: {}]   ;;  %s1522_s1 = inlined_call_operand.hbm [shape: f32[8,8,32], index: 1, kind: input, shape index: {}]   ;;  %s1523_s2 = inlined_call_operand.hbm [shape: f32[8,8,32], index: 2, kind: input, shape index: {}]   ;;  %s1524_s3 = inlined_call_operand.hbm [shape: f32[8,8,32], index: 3, kind: output, shape index: {0}]   ;;  %s1525_s4 = inlined_call_operand.hbm [shape: f32[8,8,8], index: 4, kind: output, shape index: {1}]  }
   0x1   :  { %11 = vsyncpa [#allocation7], 0 }
   0x2   :  { %12 = vsyncpa [#allocation5], 0 }
   0x3   :  { %13 = vsyncpa [#allocation11], 0  ;;  %s31_s17 = sshll.u32 %s1522_s1, 4  ;;  %s1101_s18 = smov [#allocation6]   ;;  %s32_s17 = int_to_ptr.hbm [resolvable:$true] %s31_s17 }
   0x4   :  { %s33_s19 = sshll.u32 %s1101_s18, 4  ;;  %s18_s22 = sshll.u32 %s1521_s0, 4  ;;  %s34_s19 = int_to_ptr.vmem [resolvable:$true] %s33_s19  ;;  %s19_s22 = int_to_ptr.hbm [resolvable:$true] %s18_s22 }
   0x5   :  { %s1102_s23 = smov 128   ;;  %s1103_s24 = smov 8  }
   0x6   :  { %39 = dma.hbm_to_vmem [thread:$0]  %s32_s17, 1024, %s34_s19, [#allocation7], %s1102_s23, %s1102_s23, %s1103_s24  }
   0x7   :  { %s1104_s25 = smov [#allocation3]   ;;  %s44_s1 = sshll.u32 %s1523_s2, 4  ;;  %s45_s1 = int_to_ptr.hbm [resolvable:$true] %s44_s1 }
   0x8   :  { %s20_s26 = sshll.u32 %s1104_s25, 4  ;;  %s1105_s0 = smov [#allocation8]   ;;  %s21_s26 = int_to_ptr.vmem [resolvable:$true] %s20_s26 }
   0x9   :  { %26 = dma.hbm_to_vmem [thread:$0]  %s19_s22, 1024, %s21_s26, [#allocation4], %s1102_s23, %s1102_s23, %s1103_s24  }
   0xa   :  { %s46_s29 = sshll.u32 %s1105_s0, 4  ;;  %s47_s29 = int_to_ptr.vmem [resolvable:$true] %s46_s29 }
   0xb   :  { %52 = dma.hbm_to_vmem [thread:$0]  %s45_s1, 1024, %s47_s29, [#allocation7], %s1102_s23, %s1102_s23, %s1103_s24  }
   0xc   :  { %1093 = dma.done.wait [#allocation4], 1024  }
   0xd   :  { %1094 = vsyncadd [#allocation4], 4294966272 }
   0xe   :  { %1095 = dma.done.wait [#allocation7], 2048  }
   0xf   :  { %1096 = vsyncadd [#allocation7], 4294965248  ;;  %vm85_vm0 = vcmask 261120   ;;  %v1151_v0 = vld [vmem:[#allocation3 + $0x10] sm:$0xff]  ;;  %v1163_v6 = vld [vmem:[#allocation3 + $0x18] sm:$0xff]  ;;  %s1106_s2 = smov [#allocation10]  }
  0x10   :  { %v1153_v1 = vld [vmem:[#allocation6 + $0x30] sm:$0xff]  ;;  %v224_v3 = vmul.f32 %v1151_v0, %v1151_v0  ;;  %v1165_v7 = vld [vmem:[#allocation6 + $0x38] sm:$0xff]  ;;  %v225_v12 = vmul.f32 %v1163_v6, %v1163_v6  ;;  %v1183_v19 = vld [vmem:[#allocation6 + $0x8] sm:$0xff]  ;;  %s857_s30 = sshll.u32 %s1106_s2, 4  ;;  %s859_s7 = sshll.u32 %s1525_s4, 4  ;;  %s858_s30 = int_to_ptr.vmem [resolvable:$true] %s857_s30  ;;  %s860_s7 = int_to_ptr.hbm [resolvable:$true] %s859_s7 }
  0x11   :  { %v1155_v2 = vld [vmem:[#allocation6 + $0x10] sm:$0xff]  ;;  %v83_v4 = vmul.f32 %v1153_v1, %v1153_v1  ;;  %v1170_v11 = vld [vmem:[#allocation6 + $0x18] sm:$0xff]  ;;  %v84_v13 = vmul.f32 %v1165_v7, %v1165_v7  ;;  %v1185_v20 = vld [vmem:[#allocation6] sm:$0xff]  ;;  %v78_v22 = vmul.f32 %v1183_v19, %v1183_v19  ;;  %s1107_s4 = smov [#allocation9]   ;;  %s846_s11 = sshll.u32 %s1524_s3, 4  ;;  %s847_s11 = int_to_ptr.hbm [resolvable:$true] %s846_s11 }
  0x12   :  { %v79_v5 = vmul.f32 %v1155_v2, %v1155_v2  ;;  %v237_v8 = vsel %vm85_vm0, %v224_v3, 0.0  ;;  %v80_v14 = vmul.f32 %v1170_v11, %v1170_v11  ;;  %v240_v15 = vsel %vm85_vm0, %v225_v12, 0.0  ;;  %v1181_v18 = vld [vmem:[#allocation3 + $0x30] sm:$0xff]  ;;  %v1196_v27 = vld [vmem:[#allocation6 + $0x28] sm:$0xff]  ;;  %v1198_v28 = vld [vmem:[#allocation6 + $0x20] sm:$0xff]  ;;  %s844_s8 = sshll.u32 %s1107_s4, 4  ;;  %s845_s8 = int_to_ptr.vmem [resolvable:$true] %s844_s8 }
  0x13   :  { %v104_v9 = vsel %vm85_vm0, %v83_v4, 0.0  ;;  %238 = vadd.xlane.f32.xlu2 %v237_v8  ;;  %v107_v16 = vsel %vm85_vm0, %v84_v13, 0.0  ;;  %v228_v21 = vmul.f32 %v1181_v18, %v1181_v18  ;;  %v77_v23 = vmul.f32 %v1185_v20, %v1185_v20  ;;  %v1200_v29 = vld [vmem:[#allocation3 + $0x38] sm:$0xff]  ;;  %v1211_v36 = vld [vmem:[#allocation3 + $0x20] sm:$0xff]  ;;  %v1213_v37 = vld [vmem:[#allocation3 + $0x8] sm:$0xff] }
  0x14   :  { %v92_v10 = vsel %vm85_vm0, %v79_v5, 0.0  ;;  %105 = vadd.xlane.f32.xlu1 %v104_v9  ;;  %v95_v17 = vsel %vm85_vm0, %v80_v14, 0.0  ;;  %v89_v25 = vsel %vm85_vm0, %v78_v22, 0.0  ;;  %v82_v30 = vmul.f32 %v1196_v27, %v1196_v27  ;;  %v1215_v38 = vld [vmem:[#allocation3] sm:$0xff]  ;;  %v1226_v45 = vld [vmem:[#allocation3 + $0x28] sm:$0xff] }
  0x15   :  { %93 = vadd.xlane.f32.xlu0 %v92_v10  ;;  %v249_v24 = vsel %vm85_vm0, %v228_v21, 0.0  ;;  %v86_v26 = vsel %vm85_vm0, %v77_v23, 0.0  ;;  %v81_v31 = vmul.f32 %v1198_v28, %v1198_v28  ;;  %v229_v32 = vmul.f32 %v1200_v29, %v1200_v29 }
  0x16   :  { %v101_v33 = vsel %vm85_vm0, %v82_v30, 0.0  ;;  %v226_v39 = vmul.f32 %v1211_v36, %v1211_v36  ;;  %v223_v40 = vmul.f32 %v1213_v37, %v1213_v37  ;;  %v222_v41 = vmul.f32 %v1215_v38, %v1215_v38 }
  0x17   :  { %v98_v34 = vsel %vm85_vm0, %v81_v31, 0.0  ;;  %v252_v35 = vsel %vm85_vm0, %v229_v32, 0.0  ;;  %v227_v46 = vmul.f32 %v1226_v45, %v1226_v45 }
  0x18   :  { %v243_v42 = vsel %vm85_vm0, %v226_v39, 0.0  ;;  %v234_v43 = vsel %vm85_vm0, %v223_v40, 0.0  ;;  %v231_v44 = vsel %vm85_vm0, %v222_v41, 0.0 }
  0x19   :  { %v246_v47 = vsel %vm85_vm0, %v227_v46, 0.0 }
  0x1b   :  { %241 = vadd.xlane.f32.xlu2 %v240_v15 }
  0x1c   :  { %108 = vadd.xlane.f32.xlu1 %v107_v16 }
  0x1d   :  { %96 = vadd.xlane.f32.xlu0 %v95_v17 }
  0x23   :  { %250 = vadd.xlane.f32.xlu2 %v249_v24 }
  0x24   :  { %90 = vadd.xlane.f32.xlu1 %v89_v25 }
  0x25   :  { %87 = vadd.xlane.f32.xlu0 %v86_v26 }
  0x2b   :  { %102 = vadd.xlane.f32.xlu2 %v101_v33 }
  0x2c   :  { %99 = vadd.xlane.f32.xlu1 %v98_v34 }
  0x2d   :  { %253 = vadd.xlane.f32.xlu0 %v252_v35 }
  0x33   :  { %244 = vadd.xlane.f32.xlu2 %v243_v42 }
  0x34   :  { %235 = vadd.xlane.f32.xlu1 %v234_v43 }
  0x35   :  { %232 = vadd.xlane.f32.xlu0 %v231_v44 }
  0x3d   :  { %247 = vadd.xlane.f32.xlu0 %v246_v47 }
  0x86   :  { %v239_v48 = vpop.xlane.xlu2 %238 }
  0x87   :  { %v106_v49 = vpop.xlane.xlu1 %105  ;;  %v1231_v50 = vmax.f32 %v239_v48, 1e-24 }
  0x88   :  { %v116_v51 = vmax.f32 %v106_v49, 1e-24  ;;  %v94_v52 = vpop.xlane.xlu0 %93 }
  0x89   :  { %v112_v53 = vmax.f32 %v94_v52, 1e-24  ;;  %909 = vrsqrt.f32 %v1231_v50  ;;  %vm289_vm6 = vweird.f32 %v1231_v50 }
  0x8a   :  { %911 = vrsqrt.f32 %v116_v51  ;;  %vm184_vm1 = vweird.f32 %v116_v51 }
  0x8b   :  { %913 = vrsqrt.f32 %v112_v53  ;;  %vm144_vm5 = vweird.f32 %v112_v53 }
  0x8e   :  { %v242_v54 = vpop.xlane.xlu2 %241 }
  0x8f   :  { %v109_v55 = vpop.xlane.xlu1 %108  ;;  %v1234_v56 = vpop.eup %909  ;;  %v1236_v57 = vmax.f32 %v242_v54, 1e-24 }
  0x90   :  { %v1238_v58 = vmax.f32 %v109_v55, 1e-24  ;;  %v97_v59 = vpop.xlane.xlu0 %96  ;;  %v912_v60 = vpop.eup %911  ;;  %v284_v61 = vmul.f32 %v1234_v56, %v1231_v50  ;;  %vm290_vm8 = vweird.f32 %v1234_v56 }
  0x91   :  { %v1242_v62 = vmax.f32 %v97_v59, 1e-24  ;;  %v914_v63 = vpop.eup %913  ;;  %v179_v3 = vmul.f32 %v912_v60, %v116_v51  ;;  %915 = vrsqrt.f32 %v1236_v57  ;;  %vm185_vm2 = vweird.f32 %v912_v60  ;;  %vm1297_vm14 = vmor %vm289_vm6, %vm290_vm8 }
  0x92   :  { %v285_v4 = vmul.f32 %v1234_v56, %v284_v61  ;;  %v139_v5 = vmul.f32 %v914_v63, %v112_v53  ;;  %917 = vrsqrt.f32 %v1238_v58  ;;  %vm145_vm3 = vweird.f32 %v914_v63  ;;  %vm186_vm4 = vmor %vm184_vm1, %vm185_vm2 }
  0x93   :  { %v180_v8 = vmul.f32 %v912_v60, %v179_v3  ;;  %919 = vrsqrt.f32 %v1242_v62  ;;  %vm146_vm7 = vmor %vm144_vm5, %vm145_vm3  ;;  %vm194_vm9 = vweird.f32 %v1238_v58  ;;  %vm154_vm10 = vweird.f32 %v1242_v62 }
  0x94   :  { %v140_v9 = vmul.f32 %v914_v63, %v139_v5  ;;  %v286_v12 = vmul.f32 0.5, %v285_v4  ;;  %vm299_vm15 = vweird.f32 %v1236_v57 }
  0x95   :  { %v181_v10 = vmul.f32 0.5, %v180_v8 }
  0x96   :  { %v141_v13 = vmul.f32 0.5, %v140_v9  ;;  %v251_v14 = vpop.xlane.xlu2 %250  ;;  %v287_v33 = vsub.f32 1.5, %v286_v12 }
  0x97   :  { %v91_v15 = vpop.xlane.xlu1 %90  ;;  %v1248_v16 = vpop.eup %915  ;;  %v182_v17 = vsub.f32 1.5, %v181_v10  ;;  %v1250_v21 = vmax.f32 %v251_v14, 1e-24 }
  0x98   :  { %v1252_v22 = vmax.f32 %v91_v15, 1e-24  ;;  %v88_v23 = vpop.xlane.xlu0 %87  ;;  %v1254_v24 = vpop.eup %917  ;;  %v142_v25 = vsub.f32 1.5, %v141_v13  ;;  %v294_v31 = vmul.f32 %v1248_v16, %v1236_v57  ;;  %v288_v49 = vmul.f32 %v1234_v56, %v287_v33 }
  0x99   :  { %v1256_v26 = vpop.eup %919  ;;  %v183_v30 = vmul.f32 %v912_v60, %v182_v17  ;;  %v189_v32 = vmul.f32 %v1254_v24, %v1238_v58  ;;  %921 = vrsqrt.f32 %v1250_v21  ;;  %v1274_v48 = vmax.f32 %v88_v23, 1e-24 }
  0x9a   :  { %v143_v34 = vmul.f32 %v914_v63, %v142_v25  ;;  %v149_v35 = vmul.f32 %v1256_v26, %v1242_v62  ;;  %923 = vrsqrt.f32 %v1252_v22  ;;  %v295_v46 = vmul.f32 %v1248_v16, %v294_v31 }
  0x9b   :  { %v187_v39 = vsel %vm186_vm4, %v912_v60, %v183_v30  ;;  %v190_v40 = vmul.f32 %v1254_v24, %v189_v32  ;;  %vm195_vm11 = vweird.f32 %v1254_v24  ;;  %925 = vrsqrt.f32 %v1274_v48 }
  0x9c   :  { %v204_v41 = vmul.f32 %v187_v39, %v1153_v1  ;;  %v147_v42 = vsel %vm146_vm7, %v914_v63, %v143_v34  ;;  %v150_v43 = vmul.f32 %v1256_v26, %v149_v35  ;;  %vm155_vm12 = vweird.f32 %v1256_v26  ;;  %vm196_vm2 = vmor %vm194_vm9, %vm195_vm11 }
  0x9d   :  { %v200_v44 = vmul.f32 %v147_v42, %v1155_v2  ;;  %v191_v47 = vmul.f32 0.5, %v190_v40  ;;  %vm329_vm13 = vweird.f32 %v1250_v21  ;;  %v296_v3 = vmul.f32 0.5, %v295_v46  ;;  %vm156_vm3 = vmor %vm154_vm10, %vm155_vm12 }
  0x9e   :  { %212 = vst.msk [vmem:[#allocation2 + $0x30] sm:$0xff] %vm85_vm0, %v204_v41  ;;  %v151_v51 = vmul.f32 0.5, %v150_v43  ;;  %v103_v1 = vpop.xlane.xlu2 %102  ;;  %vm300_vm1 = vweird.f32 %v1248_v16  ;;  %v292_v10 = vsel %vm1297_vm14, %v1234_v56, %v288_v49  ;;  %vm134_vm4 = vweird.f32 %v1252_v22 }
  0x9f   :  { %v100_v52 = vpop.xlane.xlu1 %99  ;;  %v1280_v53 = vpop.eup %921  ;;  %208 = vst.msk [vmem:[#allocation2 + $0x10] sm:$0xff] %vm85_vm0, %v200_v44  ;;  %v192_v2 = vsub.f32 1.5, %v191_v47  ;;  %v1285_v54 = vmax.f32 %v103_v1, 1e-24  ;;  %v297_v23 = vsub.f32 1.5, %v296_v3  ;;  %v345_v25 = vmul.f32 10.0, %v292_v10 }
  0xa0   :  { %v254_v55 = vpop.xlane.xlu0 %253  ;;  %v152_v59 = vsub.f32 1.5, %v151_v51  ;;  %v324_v60 = vmul.f32 %v1280_v53, %v1250_v21  ;;  %v1291_v61 = vpop.eup %923  ;;  %v1305_v5 = vmax.f32 %v100_v52, 1e-24  ;;  %vm330_vm5 = vweird.f32 %v1280_v53 }
  0xa1   :  { %v193_v4 = vmul.f32 %v1254_v24, %v192_v2  ;;  %927 = vrsqrt.f32 %v1285_v54  ;;  %v129_v9 = vmul.f32 %v1291_v61, %v1252_v22  ;;  %v1325_v58 = vmax.f32 %v254_v55, 1e-24  ;;  %v1330_v17 = vpop.eup %925  ;;  %vm331_vm8 = vmor %vm329_vm13, %vm330_vm5 }
  0xa2   :  { %v153_v50 = vmul.f32 %v1256_v26, %v152_v59  ;;  %v325_v8 = vmul.f32 %v1280_v53, %v324_v60  ;;  %929 = vrsqrt.f32 %v1305_v5  ;;  %vm124_vm6 = vweird.f32 %v1274_v48  ;;  %vm1382_vm13 = vmor %vm299_vm15, %vm300_vm1 }
  0xa3   :  { %v197_v12 = vsel %vm196_vm2, %v1254_v24, %v193_v4  ;;  %v130_v56 = vmul.f32 %v1291_v61, %v129_v9  ;;  %931 = vrsqrt.f32 %v1325_v58  ;;  %vm135_vm7 = vweird.f32 %v1291_v61 }
  0xa4   :  { %v205_v13 = vmul.f32 %v197_v12, %v1165_v7  ;;  %v157_v14 = vsel %vm156_vm3, %v1256_v26, %v153_v50  ;;  %v326_v15 = vmul.f32 0.5, %v325_v8  ;;  %v119_v26 = vmul.f32 %v1330_v17, %v1274_v48  ;;  %vm136_vm11 = vmor %vm134_vm4, %vm135_vm7 }
  0xa5   :  { %v201_v24 = vmul.f32 %v157_v14, %v1170_v11  ;;  %v365_v62 = vld [vmem:[#allocation2 + $0x30] sm:$0xff]  ;;  %v131_v7 = vmul.f32 0.5, %v130_v56  ;;  %v353_v40 = vmul.f32 %v345_v25, %v1151_v0  ;;  %v298_v47 = vmul.f32 %v1248_v16, %v297_v23 }
  0xa6   :  { %213 = vst.msk [vmem:[#allocation2 + $0x38] sm:$0xff] %vm85_vm0, %v205_v13  ;;  %v327_v30 = vsub.f32 1.5, %v326_v15  ;;  %v361_v31 = vld [vmem:[#allocation2 + $0x10] sm:$0xff]  ;;  %v245_v32 = vpop.xlane.xlu2 %244  ;;  %v120_v43 = vmul.f32 %v1330_v17, %v119_v26  ;;  %vm174_vm9 = vweird.f32 %v1285_v54  ;;  %vm164_vm10 = vweird.f32 %v1305_v5 }
  0xa7   :  { %v236_v33 = vpop.xlane.xlu1 %235  ;;  %v1339_v34 = vpop.eup %927  ;;  %209 = vst.msk [vmem:[#allocation2 + $0x18] sm:$0xff] %vm85_vm0, %v201_v24  ;;  %882 = vmatpush.xpose.msk.msra.mxu2 %vm85_vm0, %v361_v31  ;;  %v1344_v11 = vmax.f32 %v245_v32, 1e-24  ;;  %v132_v42 = vsub.f32 1.5, %v131_v7  ;;  %vm125_vm12 = vweird.f32 %v1330_v17  ;;  %v302_v57 = vsel %vm1382_vm13, %v1248_v16, %v298_v47 }
  0xa8   :  { %v1346_v35 = vmax.f32 %v236_v33, 1e-24  ;;  %v233_v39 = vpop.xlane.xlu0 %232  ;;  %v328_v41 = vmul.f32 %v1280_v53, %v327_v30  ;;  %v169_v44 = vmul.f32 %v1339_v34, %v1285_v54  ;;  %v1354_v46 = vpop.eup %929  ;;  %v121_v51 = vmul.f32 0.5, %v120_v43  ;;  %vm126_vm15 = vmor %vm124_vm6, %vm125_vm12 }
  0xa9   :  { %933 = vrsqrt.f32 %v1344_v11  ;;  %v133_v49 = vmul.f32 %v1291_v61, %v132_v42  ;;  %v1368_v52 = vpop.eup %931  ;;  %v159_v21 = vmul.f32 %v1354_v46, %v1305_v5  ;;  %v1391_v4 = vmax.f32 %v233_v39, 1e-24 }
  0xaa   :  { %v332_v0 = vsel %vm331_vm8, %v1280_v53, %v328_v41  ;;  %v170_v1 = vmul.f32 %v1339_v34, %v169_v44  ;;  %883 = vmatmul.msk.f32.vlgmr.msra.gmra.mxu2 %vm85_vm0, %v353_v40  ;;  %935 = vrsqrt.f32 %v1346_v35  ;;  %v122_v59 = vsub.f32 1.5, %v121_v51 }
  0xab   :  { %890 = vmatpush.xpose.msk.msrb.mxu2 %vm85_vm0, %v365_v62  ;;  %v349_v2 = vmul.f32 10.0, %v332_v0  ;;  %v137_v55 = vsel %vm136_vm11, %v1291_v61, %v133_v49  ;;  %v334_v60 = vmul.f32 %v1368_v52, %v1325_v58  ;;  %v160_v3 = vmul.f32 %v1354_v46, %v159_v21 }
  0xac   :  { %v171_v22 = vmul.f32 0.5, %v170_v1  ;;  %v199_v63 = vmul.f32 %v137_v55, %v1183_v19  ;;  %v123_v8 = vmul.f32 %v1330_v17, %v122_v59  ;;  %vm175_vm14 = vweird.f32 %v1339_v34 }
  0xad   :  { %v366_v50 = vld [vmem:[#allocation2 + $0x38] sm:$0xff]  ;;  %v335_v61 = vmul.f32 %v1368_v52, %v334_v60  ;;  %v161_v19 = vmul.f32 0.5, %v160_v3  ;;  %vm165_vm1 = vweird.f32 %v1354_v46  ;;  %937 = vrsqrt.f32 %v1391_v4  ;;  %vm176_vm2 = vmor %vm174_vm9, %vm175_vm14 }
  0xae   :  { %v172_v9 = vsub.f32 1.5, %v171_v22  ;;  %v362_v10 = vld [vmem:[#allocation2 + $0x18] sm:$0xff]  ;;  %207 = vst.msk [vmem:[#allocation2 + $0x8] sm:$0xff] %vm85_vm0, %v199_v63  ;;  %v357_v13 = vmul.f32 %v349_v2, %v1181_v18  ;;  %v127_v14 = vsel %vm126_vm15, %v1330_v17, %v123_v8  ;;  %v346_v23 = vmul.f32 10.0, %v302_v57  ;;  %vm166_vm4 = vmor %vm164_vm10, %vm165_vm1 }
  0xaf   :  { %v1399_v12 = vpop.eup %933  ;;  %884 = vmatpush.xpose.msk.msra.mxu3 %vm85_vm0, %v362_v10  ;;  %v336_v56 = vmul.f32 0.5, %v335_v61  ;;  %v198_v24 = vmul.f32 %v127_v14, %v1185_v20  ;;  %v162_v62 = vsub.f32 1.5, %v161_v19  ;;  %vm340_vm3 = vweird.f32 %v1368_v52 }
  0xb0   :  { %v248_v16 = vpop.xlane.xlu0 %247  ;;  %v173_v15 = vmul.f32 %v1339_v34, %v172_v9  ;;  %v936_v48 = vpop.eup %935  ;;  %v304_v18 = vmul.f32 %v1399_v12, %v1344_v11  ;;  %vm339_vm5 = vweird.f32 %v1325_v58  ;;  %vm279_vm7 = vweird.f32 %v1346_v35 }
  0xb1   :  { %v1420_v25 = vmax.f32 %v248_v16, 1e-24  ;;  %v337_v30 = vsub.f32 1.5, %v336_v56  ;;  %v274_v7 = vmul.f32 %v936_v48, %v1346_v35  ;;  %206 = vst.msk [vmem:[#allocation2] sm:$0xff] %vm85_vm0, %v198_v24  ;;  %v163_v54 = vmul.f32 %v1354_v46, %v162_v62  ;;  %vm341_vm6 = vmor %vm339_vm5, %vm340_vm3 }
  0xb2   :  { %v177_v17 = vsel %vm176_vm2, %v1339_v34, %v173_v15  ;;  %891 = vmatmul.msk.f32.vlgmr.msrb.gmra.mxu2 %vm85_vm0, %v357_v13  ;;  %v354_v34 = vmul.f32 %v346_v23, %v1163_v6  ;;  %vm280_vm8 = vweird.f32 %v936_v48  ;;  %vm309_vm11 = vweird.f32 %v1344_v11 }
  0xb3   :  { %892 = vmatpush.xpose.msk.msrb.mxu3 %vm85_vm0, %v366_v50  ;;  %v203_v20 = vmul.f32 %v177_v17, %v1196_v27  ;;  %939 = vrsqrt.f32 %v1420_v25  ;;  %v338_v26 = vmul.f32 %v1368_v52, %v337_v30  ;;  %v275_v31 = vmul.f32 %v936_v48, %v274_v7  ;;  %v938_v32 = vpop.eup %937  ;;  %vm281_vm9 = vmor %vm279_vm7, %vm280_vm8 }
  0xb4   :  { %v167_v33 = vsel %vm166_vm4, %v1354_v46, %v163_v54  ;;  %v305_v27 = vmul.f32 %v1399_v12, %v304_v18  ;;  %v264_v58 = vmul.f32 %v938_v32, %v1391_v4  ;;  %885 = vmatmul.msk.f32.vlgmr.msra.gmra.mxu3 %vm85_vm0, %v354_v34  ;;  %vm270_vm10 = vweird.f32 %v938_v32 }
  0xb5   :  { %211 = vst.msk [vmem:[#allocation2 + $0x28] sm:$0xff] %vm85_vm0, %v203_v20  ;;  %v202_v39 = vmul.f32 %v167_v33, %v1198_v28  ;;  %v342_v5 = vsel %vm341_vm6, %v1368_v52, %v338_v26  ;;  %v276_v40 = vmul.f32 0.5, %v275_v31  ;;  %v360_v41 = vld [vmem:[#allocation2 + $0x8] sm:$0xff]  ;;  %vm310_vm12 = vweird.f32 %v1399_v12 }
  0xb6   :  { %v350_v42 = vmul.f32 10.0, %v342_v5  ;;  %880 = vmatpush.xpose.msk.msra.mxu1 %vm85_vm0, %v360_v41  ;;  %v306_v44 = vmul.f32 0.5, %v305_v27  ;;  %v265_v28 = vmul.f32 %v938_v32, %v264_v58  ;;  %vm269_vm13 = vweird.f32 %v1391_v4  ;;  %vm311_vm2 = vmor %vm309_vm11, %vm310_vm12  ;;  %v626_v58 = vld [vmem:[#allocation8 + $0x10] sm:$0xff] }
  0xb7   :  { %210 = vst.msk [vmem:[#allocation2 + $0x20] sm:$0xff] %vm85_vm0, %v202_v39  ;;  %v277_v43 = vsub.f32 1.5, %v276_v40  ;;  %vm271_vm14 = vmor %vm269_vm13, %vm270_vm10  ;;  %vm319_vm15 = vweird.f32 %v1420_v25  ;;  %vm591_vm4 = vcmask 64512   ;;  %712 = vmatpush.msra.mxu2 %v626_v58 }
  0xb8   :  { %v359_v0 = vld [vmem:[#allocation2] sm:$0xff]  ;;  %v266_v49 = vmul.f32 0.5, %v265_v28  ;;  %v358_v51 = vmul.f32 %v350_v42, %v1200_v29  ;;  %v307_v21 = vsub.f32 1.5, %v306_v44  ;;  %v625_v28 = vld [vmem:[#allocation8 + $0x8] sm:$0xff] }
  0xb9   :  { %v940_v6 = vpop.eup %939  ;;  %v278_v46 = vmul.f32 %v936_v48, %v277_v43  ;;  %878 = vmatpush.xpose.msk.msra.mxu0 %vm85_vm0, %v359_v0  ;;  %v627_v43 = vld [vmem:[#allocation8 + $0x18] sm:$0xff]  ;;  %v624_v44 = vld [vmem:[#allocation8] sm:$0xff] }
  0xba   :  { %v314_v47 = vmul.f32 %v940_v6, %v1420_v25  ;;  %v267_v53 = vsub.f32 1.5, %v266_v49  ;;  %vm320_vm1 = vweird.f32 %v940_v6  ;;  %v308_v63 = vmul.f32 %v1399_v12, %v307_v21  ;;  %735 = vmatpush.msra.mxu3 %v627_v43  ;;  %v631_v49 = vld [vmem:[#allocation8 + $0x38] sm:$0xff] }
  0xbb   :  { %v282_v2 = vsel %vm281_vm9, %v936_v48, %v278_v46  ;;  %vm321_vm3 = vmor %vm319_vm15, %vm320_vm1  ;;  %v630_v46 = vld [vmem:[#allocation8 + $0x30] sm:$0xff] }
  0xbc   :  { %v315_v1 = vmul.f32 %v940_v6, %v314_v47  ;;  %v364_v52 = vld [vmem:[#allocation2 + $0x28] sm:$0xff]  ;;  %v344_v35 = vmul.f32 10.0, %v282_v2  ;;  %v268_v59 = vmul.f32 %v938_v32, %v267_v53  ;;  %893 = vmatmul.msk.f32.vlgmr.msrb.gmra.mxu3 %vm85_vm0, %v358_v51  ;;  %v312_v8 = vsel %vm311_vm2, %v1399_v12, %v308_v63  ;;  %804 = vmatpush.msrb.mxu2 %v630_v46  ;;  %v628_v51 = vld [vmem:[#allocation8 + $0x20] sm:$0xff] }
  0xbd   :  { %888 = vmatpush.xpose.msk.msrb.mxu1 %vm85_vm0, %v364_v52  ;;  %v347_v10 = vmul.f32 10.0, %v312_v8  ;;  %827 = vmatpush.msrb.mxu3 %v631_v49 }
  0xbe   :  { %v316_v55 = vmul.f32 0.5, %v315_v1  ;;  %v363_v29 = vld [vmem:[#allocation2 + $0x20] sm:$0xff]  ;;  %v352_v22 = vmul.f32 %v344_v35, %v1213_v37  ;;  %v272_v3 = vsel %vm271_vm14, %v938_v32, %v268_v59  ;;  %v629_v1 = vld [vmem:[#allocation8 + $0x28] sm:$0xff] }
  0xbf   :  { %886 = vmatpush.xpose.msk.msrb.mxu0 %vm85_vm0, %v363_v29  ;;  %v343_v50 = vmul.f32 10.0, %v272_v3  ;;  %v355_v19 = vmul.f32 %v347_v10, %v1211_v36 }
  0xc0   :  { %v317_v60 = vsub.f32 1.5, %v316_v55  ;;  %881 = vmatmul.msk.f32.vlgmr.msra.gmra.mxu1 %vm85_vm0, %v352_v22 }
  0xc1   :  { %v351_v37 = vmul.f32 %v343_v50, %v1215_v38  ;;  %689 = vmatpush.msra.mxu1 %v625_v28 }
  0xc2   :  { %v318_v4 = vmul.f32 %v940_v6, %v317_v60 }
  0xc3   :  { %879 = vmatmul.msk.f32.vlgmr.msra.gmra.mxu0 %vm85_vm0, %v351_v37 }
  0xc4   :  { %v322_v57 = vsel %vm321_vm3, %v940_v6, %v318_v4  ;;  %666 = vmatpush.msra.mxu0 %v624_v44 }
  0xc5   :  { %v348_v9 = vmul.f32 10.0, %v322_v57 }
  0xc7   :  { %v356_v61 = vmul.f32 %v348_v9, %v1226_v45 }
  0xc9   :  { %889 = vmatmul.msk.f32.vlgmr.msrb.gmra.mxu1 %vm85_vm0, %v356_v61 }
  0xca   :  { %781 = vmatpush.msrb.mxu1 %v629_v1 }
  0xcb   :  { %887 = vmatmul.msk.f32.vlgmr.msrb.gmra.mxu0 %vm85_vm0, %v355_v19 }
  0xcc   :  { %758 = vmatpush.msrb.mxu0 %v628_v51 }
 0x12d   :  { %v442_v11 = vpop.f32.mrf.mxu2 }
 0x12e   :  { %v579_v16 = vmul.f32 1.442695, %v442_v11 }
 0x130   :  { %941 = vpow2.f32 %v579_v16 }
 0x135   :  { %v546_v15 = vpop.f32.mrf.mxu2 }
 0x136   :  { %v942_v13 = vpop.eup %941  ;;  %v587_v56 = vmul.f32 1.442695, %v546_v15 }
 0x137   :  { %v598_v38 = vsel %vm591_vm4, %v942_v13, 0.0  ;;  %v468_v12 = vpop.f32.mrf.mxu3 }
 0x138   :  { %599 = vadd.xlane.f32.xlu1 %v598_v38  ;;  %v581_v14 = vmul.f32 1.442695, %v468_v12 }
 0x13a   :  { %943 = vpow2.f32 %v581_v14 }
 0x13d   :  { %v416_v45 = vpop.f32.mrf.mxu1 }
 0x13e   :  { %v577_v23 = vmul.f32 1.442695, %v416_v45 }
 0x13f   :  { %v572_v18 = vpop.f32.mrf.mxu3 }
 0x140   :  { %945 = vpow2.f32 %v577_v23  ;;  %v944_v48 = vpop.eup %943  ;;  %v390_v36 = vpop.f32.mrf.mxu0  ;;  %v589_v7 = vmul.f32 1.442695, %v572_v18 }
 0x141   :  { %947 = vpow2.f32 %v587_v56  ;;  %v575_v24 = vmul.f32 1.442695, %v390_v36  ;;  %v601_v62 = vsel %vm591_vm4, %v944_v48, 0.0 }
 0x142   :  { %602 = vadd.xlane.f32.xlu2 %v601_v62 }
 0x143   :  { %949 = vpow2.f32 %v575_v24 }
 0x146   :  { %v520_v25 = vpop.f32.mrf.mxu1  ;;  %v946_v17 = vpop.eup %945 }
 0x147   :  { %v585_v30 = vmul.f32 1.442695, %v520_v25  ;;  %v595_v20 = vsel %vm591_vm4, %v946_v17, 0.0  ;;  %v948_v54 = vpop.eup %947 }
 0x148   :  { %596 = vadd.xlane.f32.xlu1 %v595_v20  ;;  %v494_v26 = vpop.f32.mrf.mxu0  ;;  %v610_v33 = vsel %vm591_vm4, %v948_v54, 0.0 }
 0x149   :  { %951 = vpow2.f32 %v585_v30  ;;  %v950_v31 = vpop.eup %949  ;;  %v583_v32 = vmul.f32 1.442695, %v494_v26 }
 0x14a   :  { %953 = vpow2.f32 %v589_v7  ;;  %611 = vadd.xlane.f32.xlu2 %v610_v33  ;;  %v592_v27 = vsel %vm591_vm4, %v950_v31, 0.0 }
 0x14b   :  { %955 = vpow2.f32 %v583_v32  ;;  %593 = vadd.xlane.f32.xlu0 %v592_v27 }
 0x14f   :  { %v1474_v34 = vpop.eup %951 }
 0x150   :  { %v1476_v39 = vpop.eup %953  ;;  %v607_v5 = vsel %vm591_vm4, %v1474_v34, 0.0 }
 0x151   :  { %v956_v40 = vpop.eup %955  ;;  %v613_v41 = vsel %vm591_vm4, %v1476_v39, 0.0 }
 0x152   :  { %v604_v42 = vsel %vm591_vm4, %v956_v40, 0.0  ;;  %608 = vadd.xlane.f32.xlu2 %v607_v5 }
 0x153   :  { %614 = vadd.xlane.f32.xlu0 %v613_v41  ;;  %605 = vadd.xlane.f32.xlu1 %v604_v42 }
 0x1ab   :  { %v600_v6 = vpop.xlane.xlu1 %599 }
 0x1ac   :  { %957 = vrcp.f32 %v600_v6 }
 0x1b2   :  { %v958_v47 = vpop.eup %957 }
 0x1b3   :  { %v634_v0 = vmul.f32 %v958_v47, %v942_v13 }
 0x1b5   :  { %642 = vst.msk [vmem:[#allocation10 + $0x10] sm:$0xff] %vm591_vm4, %v634_v0  ;;  %896 = vmatmul.msk.f32.vlgmr.msra.gmra.mxu2 %vm591_vm4, %v634_v0  ;;  %v603_v52 = vpop.xlane.xlu2 %602 }
 0x1b6   :  { %959 = vrcp.f32 %v603_v52 }
 0x1bb   :  { %v597_v2 = vpop.xlane.xlu1 %596 }
 0x1bc   :  { %961 = vrcp.f32 %v597_v2  ;;  %v960_v21 = vpop.eup %959 }
 0x1bd   :  { %v635_v53 = vmul.f32 %v960_v21, %v944_v48  ;;  %v612_v35 = vpop.xlane.xlu2 %611 }
 0x1be   :  { %963 = vrcp.f32 %v612_v35  ;;  %v594_v55 = vpop.xlane.xlu0 %593 }
 0x1bf   :  { %643 = vst.msk [vmem:[#allocation10 + $0x18] sm:$0xff] %vm591_vm4, %v635_v53  ;;  %965 = vrcp.f32 %v594_v55  ;;  %897 = vmatmul.msk.f32.vlgmr.msra.gmra.mxu3 %vm591_vm4, %v635_v53 }
 0x1c2   :  { %v962_v59 = vpop.eup %961 }
 0x1c3   :  { %v633_v29 = vmul.f32 %v962_v59, %v946_v17 }
 0x1c4   :  { %v964_v22 = vpop.eup %963 }
 0x1c5   :  { %641 = vst.msk [vmem:[#allocation10 + $0x8] sm:$0xff] %vm591_vm4, %v633_v29  ;;  %895 = vmatmul.msk.f32.vlgmr.msra.gmra.mxu1 %vm591_vm4, %v633_v29  ;;  %v966_v60 = vpop.eup %965  ;;  %v638_v63 = vmul.f32 %v964_v22, %v948_v54  ;;  %v609_v3 = vpop.xlane.xlu2 %608 }
 0x1c6   :  { %v632_v4 = vmul.f32 %v966_v60, %v950_v31  ;;  %v606_v50 = vpop.xlane.xlu1 %605  ;;  %967 = vrcp.f32 %v609_v3  ;;  %v615_v57 = vpop.xlane.xlu0 %614 }
 0x1c7   :  { %646 = vst.msk [vmem:[#allocation10 + $0x30] sm:$0xff] %vm591_vm4, %v638_v63  ;;  %969 = vrcp.f32 %v606_v50  ;;  %900 = vmatmul.msk.f32.vlgmr.msrb.gmra.mxu2 %vm591_vm4, %v638_v63 }
 0x1c8   :  { %640 = vst.msk [vmem:[#allocation10] sm:$0xff] %vm591_vm4, %v632_v4  ;;  %971 = vrcp.f32 %v615_v57  ;;  %894 = vmatmul.msk.f32.vlgmr.msra.gmra.mxu0 %vm591_vm4, %v632_v4 }
 0x1cc   :  { %v968_v37 = vpop.eup %967 }
 0x1cd   :  { %v970_v8 = vpop.eup %969  ;;  %v637_v9 = vmul.f32 %v968_v37, %v1474_v34 }
 0x1ce   :  { %v972_v61 = vpop.eup %971  ;;  %v636_v10 = vmul.f32 %v970_v8, %v956_v40 }
 0x1cf   :  { %645 = vst.msk [vmem:[#allocation10 + $0x28] sm:$0xff] %vm591_vm4, %v637_v9  ;;  %v639_v19 = vmul.f32 %v972_v61, %v1476_v39  ;;  %899 = vmatmul.msk.f32.vlgmr.msrb.gmra.mxu1 %vm591_vm4, %v637_v9 }
 0x1d0   :  { %644 = vst.msk [vmem:[#allocation10 + $0x20] sm:$0xff] %vm591_vm4, %v636_v10  ;;  %898 = vmatmul.msk.f32.vlgmr.msrb.gmra.mxu0 %vm591_vm4, %v636_v10 }
 0x1d1   :  { %647 = vst.msk [vmem:[#allocation10 + $0x38] sm:$0xff] %vm591_vm4, %v639_v19  ;;  %901 = vmatmul.msk.f32.vlgmr.msrb.gmra.mxu3 %vm591_vm4, %v639_v19 }
 0x1d2   :  { %865 = dma.vmem_to_hbm [thread:$0]  %s858_s30, 1024, %s860_s7, [#allocation11], %s1102_s23, %s1102_s23, %s1103_s24  }
 0x238   :  { %v714_v11 = vpop.f32.mrf.mxu2 }
 0x239   :  { %834 = vst.msk [vmem:[#allocation9 + $0x10] sm:$0xff] %vm85_vm0, %v714_v11 }
 0x242   :  { %v691_v16 = vpop.f32.mrf.mxu1  ;;  %v737_v13 = vpop.f32.mrf.mxu3 }
 0x243   :  { %833 = vst.msk [vmem:[#allocation9 + $0x8] sm:$0xff] %vm85_vm0, %v691_v16 }
 0x244   :  { %835 = vst.msk [vmem:[#allocation9 + $0x18] sm:$0xff] %vm85_vm0, %v737_v13 }
 0x245   :  { %v668_v38 = vpop.f32.mrf.mxu0 }
 0x246   :  { %832 = vst.msk [vmem:[#allocation9] sm:$0xff] %vm85_vm0, %v668_v38 }
 0x24a   :  { %v806_v12 = vpop.f32.mrf.mxu2 }
 0x24b   :  { %838 = vst.msk [vmem:[#allocation9 + $0x30] sm:$0xff] %vm85_vm0, %v806_v12 }
 0x24c   :  { %v783_v14 = vpop.f32.mrf.mxu1 }
 0x24d   :  { %v760_v15 = vpop.f32.mrf.mxu0  ;;  %837 = vst.msk [vmem:[#allocation9 + $0x28] sm:$0xff] %vm85_vm0, %v783_v14 }
 0x24e   :  { %836 = vst.msk [vmem:[#allocation9 + $0x20] sm:$0xff] %vm85_vm0, %v760_v15 }
 0x254   :  { %v829_v45 = vpop.f32.mrf.mxu3 }
 0x255   :  { %839 = vst.msk [vmem:[#allocation9 + $0x38] sm:$0xff] %vm85_vm0, %v829_v45 }
 0x256   :  { %852 = dma.vmem_to_hbm [thread:$0]  %s845_s8, 1024, %s847_s11, [#allocation5], %s1102_s23, %s1102_s23, %s1103_s24  }
 0x257   :  { %1097 = dma.done.wait [#allocation5], 1024  }
 0x258   :  { %1098 = vsyncadd [#allocation5], 4294966272 }
 0x259   :  { %1099 = dma.done.wait [#allocation11], 1024  }
 0x25a   :  { %1100 = vsyncadd [#allocation11], 4294966272 }
 0x25b   :  { %874 = vsyncpa [#allocation4], 1 }
 0x25c   :  { %875 = vsyncpa [#allocation7], 1 }
 0x25d   :  { %876 = vsyncpa [#allocation5], 1 }
 0x25e   :  { %877 = vsyncpa [#allocation11], 1 }

</bundles_post_ra>
